<compile_context>
chip_gen: v7x
topology: tpu7x:2x2x1
jax: 0.10.0
libtpu: 0.0.40
codegen_flags: <defaults>
</compile_context>

<pallas_src>
import jax
import jax.numpy as jnp
from jax.experimental import pallas as pl
from jax.experimental.pallas import tpu as pltpu

_LANE = 128


def _soft_dropout_kernel(w_ref, x_ref, o_ref):
    """w_ref: (TR, 1) f32 per-row scale; x_ref/o_ref: (TR, TC) in x.dtype."""
    o_ref[...] = (x_ref[...] * w_ref[...]).astype(o_ref.dtype)


def _round_up(v, m):
    return ((v + m - 1) // m) * m


def soft_dropout2d(x, p=0.5, *, seed=0, key=None, training=True):
    """JAX/Pallas equivalent of SoftDropout2d.forward for NCHW input."""
    if p < 0.0 or p > 1.0:
        raise ValueError(
            "soft_dropout probability has to be between 0 and 1, but got {}".format(p)
        )
    if not training:
        return x

    n, c, h, w = x.shape
    rows, cols = n * c, h * w

    # One multiplicative scale per (n, c), Uniform(1-p, 1+p), kept in f32
    # (only the product is cast back to x.dtype inside the kernel).
    if key is None:
        key = jax.random.PRNGKey(seed)
    scale = jax.random.uniform(
        key, (rows, 1), dtype=jnp.float32, minval=1.0 - p, maxval=1.0 + p
    )

    # Free metadata reshape (NCHW is contiguous): (N*C, H*W) slab.
    x2d = x.reshape(rows, cols)

    itemsize = jnp.dtype(x.dtype).itemsize
    # Native sublane packing: f32 -> 8, bf16/f16 -> 16, int8/fp8 -> 32 rows.
    sub = {4: 8, 2: 16, 1: 32}.get(itemsize, 8)

    # ~4 MiB per x buffer amortizes the ~0.35 us per-grid-step overhead.
    target_bytes = 4 * 1024 * 1024

    # Column tile: full width unless even a single sublane-high slab would
    # exceed the byte budget, in which case tile columns in 128-lane chunks.
    if sub * cols * itemsize <= target_bytes or cols <= _LANE:
        tc = cols  # full last dim -> exempt from 128-divisibility rule
    else:
        tc = max(_LANE, (target_bytes // (sub * itemsize)) // _LANE * _LANE)
        tc = min(tc, _round_up(cols, _LANE))
    col_grid = pl.cdiv(cols, tc)

    # Row tile: as many sublane-multiples as fit the byte budget.
    tr = (target_bytes // max(tc * itemsize, 1)) // sub * sub
    tr = max(sub, min(tr, _round_up(rows, sub)))
    row_grid = pl.cdiv(rows, tr)

    # Give v7x's two TensorCores at least two row-grid steps when possible.
    if row_grid < 2 and rows > sub:
        tr = _round_up(pl.cdiv(rows, 2), sub)
        row_grid = pl.cdiv(rows, tr)

    # Scoped-VMEM budget: double-buffered x + out tiles + (tr,1) f32 scale
    # (lane-padded to 128) + headroom.  Capped at 48 MiB (v7x has 64 MiB).
    tile_bytes = tr * tc * itemsize
    scale_buf = tr * _LANE * 4
    vmem_needed = 2 * tile_bytes + 2 * tile_bytes + 2 * scale_buf + (2 << 20)
    vmem_limit = int(min(max(vmem_needed, 32 * 1024 * 1024), 48 * 1024 * 1024))

    out2d = pl.pallas_call(
        _soft_dropout_kernel,
        out_shape=jax.ShapeDtypeStruct((rows, cols), x.dtype),
        grid=(row_grid, col_grid),
        in_specs=[
            pl.BlockSpec((tr, 1), lambda i, j: (i, 0)),   # per-row scale (f32)
            pl.BlockSpec((tr, tc), lambda i, j: (i, j)),  # x tile
        ],
        out_specs=pl.BlockSpec((tr, tc), lambda i, j: (i, j)),
        compiler_params=pltpu.CompilerParams(
            dimension_semantics=("parallel", "parallel"),
            vmem_limit_bytes=vmem_limit,
        ),
    )(scale, x2d)

    return out2d.reshape(n, c, h, w)


if __name__ == "__main__":
    key = jax.random.PRNGKey(0)
    kx, ks = jax.random.split(key)
    N, C, H, W = 2, 4, 16, 16
    x = jax.random.normal(kx, (N, C, H, W), dtype=jnp.float32)

    p = 0.5
    y = soft_dropout2d(x, p=p, key=ks, training=True)
    y = jax.block_until_ready(y)

    # Semantics checks (the exact RNG stream cannot match PyTorch's):
    # per-(n,c) scale must be constant over H,W and lie inside [1-p, 1+p];
    # eval mode must be the identity.  Use a per-row least-squares estimate of
    # the scale so exact zeros in x cannot produce inf/NaN.
    x2 = x.reshape(N * C, -1)
    y2 = y.reshape(N * C, -1)
    s = jnp.sum(y2 * x2, axis=1, keepdims=True) / jnp.sum(x2 * x2, axis=1, keepdims=True)
    assert jnp.allclose(y2, x2 * s, atol=1e-5, rtol=1e-5), "scale not constant over H,W"
    assert bool(jnp.all(s >= 1.0 - p - 1e-5)) and bool(
        jnp.all(s <= 1.0 + p + 1e-5)
    ), "scale outside [1-p, 1+p]"
    y_eval = soft_dropout2d(x, p=p, training=False)
    assert jnp.array_equal(y_eval, x), "eval mode must be identity"

    print("KERNEL_OK")
</pallas_src>

<mosaic_0001>
module attributes {stable_mosaic.version = 11 : i64} {
  func.func @_soft_dropout_kernel(%arg0: i32, %arg1: i32, %arg2: memref<8x1xf32, #tpu.memory_space<vmem>>, %arg3: memref<8x256xf32, #tpu.memory_space<vmem>>, %arg4: memref<8x256xf32, #tpu.memory_space<vmem>>) attributes {dimension_semantics = [#tpu.dimension_semantics<parallel>, #tpu.dimension_semantics<parallel>], iteration_bounds = array<i64: 1, 1>, scalar_prefetch = 0 : i64, scratch_operands = 0 : i64, tpu.core_type = #tpu.core_type<tc>, window_params = [{transform_indices = @transform_0, window_bounds = array<i64: 8, 1>}, {transform_indices = @transform_1, window_bounds = array<i64: 8, 256>}, {transform_indices = @transform_2, window_bounds = array<i64: 8, 256>}]} {
    %c0 = arith.constant 0 : index
    %c0_0 = arith.constant 0 : index
    %0 = vector.load %arg3[%c0, %c0_0] : memref<8x256xf32, #tpu.memory_space<vmem>>, vector<8x256xf32>
    %c0_1 = arith.constant 0 : index
    %c0_2 = arith.constant 0 : index
    %1 = vector.load %arg2[%c0_1, %c0_2] : memref<8x1xf32, #tpu.memory_space<vmem>>, vector<8x1xf32>
    %2 = vector.broadcast %1 : vector<8x1xf32> to vector<8x256xf32>
    %3 = arith.mulf %0, %2 : vector<8x256xf32>
    %c0_3 = arith.constant 0 : index
    %c0_4 = arith.constant 0 : index
    %4 = vector.load %arg4[%c0_3, %c0_4] : memref<8x256xf32, #tpu.memory_space<vmem>>, vector<8x256xf32>
    tpu.vector_store %arg4[%c0_3, %c0_4], %3 {strides = array<i32>} : memref<8x256xf32, #tpu.memory_space<vmem>>, vector<8x256xf32>,
    return
  }
  func.func @transform_0(%arg0: i32, %arg1: i32) -> (i32, i32) {
    %c0_i32 = arith.constant 0 : i32
    %c0_i32_0 = arith.constant 0 : i32
    return %arg0, %c0_i32 : i32, i32
  }
  func.func @transform_1(%arg0: i32, %arg1: i32) -> (i32, i32) {
    %c0_i32 = arith.constant 0 : i32
    return %arg0, %arg1 : i32, i32
  }
  func.func @transform_2(%arg0: i32, %arg1: i32) -> (i32, i32) {
    %c0_i32 = arith.constant 0 : i32
    return %arg0, %arg1 : i32, i32
  }
}

</mosaic_0001>

<bundles_post_ra>
// kernel: tpu_custom_call.1
= control target key start
LH: loop header
LB: loop body
LE: loop exit
PB: predicated region body
PF: predicated region fallthrough
CT: control target
= control target key end

     0   :  { %7 = vsyncpa [#allocation3], 0  ;;  %s148_s0 = inlined_call_operand.vmem [shape: f32[8,1], index: 0, kind: input, shape index: {}]   ;;  %s149_s1 = inlined_call_operand.hbm [shape: f32[8,256], index: 1, kind: input, shape index: {}]   ;;  %s150_s2 = inlined_call_operand.hbm [shape: f32[8,256], index: 2, kind: output, shape index: {}]  }
   0x1   :  { %8 = vsyncpa [#allocation4], 0  ;;  %s103_s9 = smov [#allocation2]   ;;  %s55_s13 = scalar_lea.hbm %s149_s1, 256 }
   0x2   :  { %s17_s10 = sshll.u32 %s103_s9, 4  ;;  %p56_p0 = scmp.ne.s32.totalorder %s149_s1, %s55_s13  ;;  %s18_s10 = int_to_ptr.vmem [resolvable:$true] %s17_s10 }
   0x3   :  { %p59_p1 = scmp.lt.u32.totalorder %s55_s13, %s149_s1 }
   0x5   :  { %p61_p2 = pnand %p59_p1, %p56_p0 }
   0x7   :  { %64 = shalt.err (!%p61_p2)
}
   0x8   :  { %s65_s18 = scalar_lea.vmem %s18_s10, 256  ;;  %p70_p4 = scmp.lt.s32.totalorder %s18_s10, %s18_s10 }
   0x9   :  { %p66_p3 = scmp.ne.s32.totalorder %s18_s10, %s65_s18  ;;  %p71_p5 = scmp.lt.s32.totalorder %s65_s18, %s65_s18 }
   0xb   :  { %p72_p6 = por %p71_p5, %p70_p4 }
   0xd   :  { %p73_p7 = pnand %p72_p6, %p66_p3 }
   0xf   :  { %76 = shalt.err (!%p73_p7)
}
  0x10   :  { %20 = dma.hbm_to_vmem [thread:$0]  %s149_s1, 256, %s18_s10, [#allocation3]  }
  0x11   :  { %99 = dma.done.wait [#allocation3], 256  }
  0x12   :  { %100 = vsyncadd [#allocation3], 4294967040  ;;  %v104_v0 = vmov 0   ;;  %v26_v1 = vld [vmem:[%s148_s0] sm:$0xff]  ;;  %v25_v3 = vld [vmem:[#allocation2 + $0x8] sm:$0xff]  ;;  %s105_s23 = smov [#allocation5]  }
  0x13   :  { %54 = vset.pattern.permute.xlu0 %v104_v0  ;;  %v24_v2 = vld [vmem:[#allocation2] sm:$0xff]  ;;  %s42_s24 = sshll.u32 %s105_s23, 4  ;;  %s43_s24 = int_to_ptr.vmem [resolvable:$true] %s42_s24 }
  0x14   :  { %29 = vperm.xlu0 %54, %v26_v1   ;;  %s77_s1 = scalar_lea.vmem %s43_s24, 256  ;;  %p82_p9 = scmp.lt.s32.totalorder %s43_s24, %s43_s24 }
  0x15   :  { %p78_p8 = scmp.ne.s32.totalorder %s43_s24, %s77_s1  ;;  %p83_p10 = scmp.lt.s32.totalorder %s77_s1, %s77_s1 }
  0x17   :  { %p84_p11 = por %p83_p10, %p82_p9 }
  0x19   :  { %p85_p12 = pnand %p84_p11, %p78_p8 }
  0x93   :  { %v30_v4 = vpop.permute.xlu0 %29 }
  0x94   :  { %v32_v5 = vmul.f32 %v30_v4, %v24_v2  ;;  %v33_v6 = vmul.f32 %v30_v4, %v25_v3 }
  0x96   :  { %34 = vst [vmem:[#allocation5] sm:$0xff] %v32_v5  ;;  %35 = vst [vmem:[#allocation5 + $0x8] sm:$0xff] %v33_v6 }
  0x97   :  { %88 = shalt.err (!%p85_p12)
}
  0x98   :  { %s89_s26 = scalar_lea.hbm %s150_s2, 256 }
  0x99   :  { %p90_p13 = scmp.ne.s32.totalorder %s150_s2, %s89_s26  ;;  %p93_p0 = scmp.lt.u32.totalorder %s89_s26, %s150_s2 }
  0x9b   :  { %p95_p1 = pnand %p93_p0, %p90_p13 }
  0x9d   :  { %98 = shalt.err (!%p95_p1)
}
  0x9e   :  { %45 = dma.vmem_to_hbm [thread:$0]  %s43_s24, 256, %s150_s2, [#allocation4]  }
  0x9f   :  { %101 = dma.done.wait [#allocation4], 256  }
  0xa0   :  { %102 = vsyncadd [#allocation4], 4294967040 }
  0xa1   :  { %49 = vsyncpa [#allocation3], 1 }
  0xa2   :  { %50 = vsyncpa [#allocation4], 1 }

</bundles_post_ra>
